<compile_context>
chip_gen: v7x
topology: tpu7x:2x2x1
jax: 0.10.0
libtpu: 0.0.40
codegen_flags: <defaults>
</compile_context>

<pallas_src>
import functools

import jax
import jax.numpy as jnp
from jax.experimental import pallas as pl
from jax.experimental.pallas import tpu as pltpu

_VMEM_LIMIT = 48 * 1024 * 1024   # <= v7x physical (64 MiB), plenty on v5e/v6e
_NEG_BIG = -1e30                 # additive mask for non-edges
_M_FLOOR = -1e4                  # finite running-max floor (lets exp underflow to 0)


# ----------------------------- Pallas kernels ------------------------------ #

def _gat_proj_kernel(x_ref, w_ref, feat_ref, el_ref, er_ref, *, n_heads, out_dim):
    """Single fused projection for one node-row tile.

    x_ref   : (T, Fin+1)   bf16 features with a trailing ones column
    w_ref   : (Fin+1, H*(D+1)+2H) bf16 augmented fc weight:
              per-head [W_h | ones-col], then W@attn_l (H cols), W@attn_r (H cols)
    feat_ref: (H, T, D+1)  bf16 per-head projected features + ones column
    el_ref  : (T, H)       f32 source logits
    er_ref  : (T, H)       f32 dest   logits
    """
    full = jnp.dot(x_ref[...], w_ref[...], preferred_element_type=jnp.float32)
    dp1 = out_dim + 1
    base = n_heads * dp1
    for h in range(n_heads):          # tiny static head count -> unrolled
        feat_ref[h] = full[:, h * dp1:(h + 1) * dp1].astype(jnp.bfloat16)
    el_ref[...] = full[:, base:base + n_heads]
    er_ref[...] = full[:, base + n_heads:base + 2 * n_heads]


def _gat_attn_kernel(er_ref, elt_ref, feat_ref, adj_ref, bias_ref, out_ref,
                     m_ref, acc_ref, *, n_heads, out_dim, apply_relu):
    """Edge-softmax + aggregation for one (dst_tile, src_tile) grid step.

    er_ref  : (Td, H)        dst logits
    elt_ref : (H, Ts)        src logits (pre-transposed)
    feat_ref: (H, Ts, D+1)   bf16 src features, last column is all-ones
    adj_ref : (Td, Ts)       int8 {0,1} mask, adj[dst, src]
    bias_ref: (1, H*D)       output bias (lane-dense)
    out_ref : (Td, H*D)      lane-dense output, written once at the last src step
    m/acc   : running max (H,Td,1), unnormalized acc (H,Td,D+1)
              (column D of acc is the softmax denominator, via the ones column)
    """
    j = pl.program_id(1)

    @pl.when(j == 0)
    def _init():
        m_ref[...] = jnp.full(m_ref.shape, _M_FLOOR, jnp.float32)
        acc_ref[...] = jnp.zeros(acc_ref.shape, jnp.float32)

    # head-independent per-tile work (hoisted out of the head loop)
    neg = jnp.where(adj_ref[...] > 0, 0.0, _NEG_BIG)        # additive edge mask
    er = er_ref[...]                                          # (Td, H)
    elt = elt_ref[...]                                        # (H, Ts)

    for h in range(n_heads):
        s = er[:, h:h + 1] + elt[h:h + 1, :] + neg            # (Td, Ts)
        s = jnp.maximum(s, 0.2 * s)                           # LeakyReLU(0.2)
        m_prev = m_ref[h]                                     # (Td, 1)
        m_new = jnp.maximum(m_prev, jnp.max(s, axis=1, keepdims=True))
        alpha = jnp.exp(m_prev - m_new)
        # masked edges: s ~ -2e29, m_new >= -1e4 -> exp underflows to exactly 0
        # TODO(synk): on v6e/v7x cast (s - m_new) to bf16 before exp for ~2x EUP.
        p = jnp.exp(s - m_new)
        acc_ref[h] = alpha * acc_ref[h] + jnp.dot(
            p.astype(jnp.bfloat16), feat_ref[h],
            preferred_element_type=jnp.float32)               # (Td, D+1), denom in col D
        m_ref[h] = m_new

    @pl.when(j == pl.num_programs(1) - 1)
    def _finalize():
        cols = []
        for h in range(n_heads):
            acc = acc_ref[h]                                  # (Td, D+1)
            inv_l = pl.reciprocal(
                jnp.maximum(acc[:, out_dim:out_dim + 1], 1e-20), approx=True)
            cols.append(acc[:, :out_dim] * inv_l)
        rst = cols[0] if n_heads == 1 else jnp.concatenate(cols, axis=1)
        rst = rst + bias_ref[...]
        if apply_relu:
            rst = jnp.maximum(rst, 0.0)
        out_ref[...] = rst


# ----------------------------- helpers ------------------------------------- #

def _round_up(x, m):
    return (x + m - 1) // m * m


def _choose_tiles(n, dst_pref=512, src_pref=1024):
    """Pick tiles first, then pad -- never silently collapse to 128-wide tiles."""
    base = _round_up(n, 128)
    tile_s = min(src_pref, base)            # multiple of 128
    npad = _round_up(n, tile_s)             # multiple of tile_s (and of 128)
    tile_d = 128
    for cand in range(dst_pref, 127, -128): # keep >=2 dst blocks for megacore / 2-TC
        if npad % cand == 0 and (npad // cand >= 2 or npad == 128):
            tile_d = cand
            break
    return npad, tile_d, tile_s


def _prepare_adj(adj, npad):
    """Pad + convert adjacency to int8 {0,1}. Called ONCE per distinct block."""
    n = adj.shape[0]
    a = (adj != 0).astype(jnp.int8)
    if npad == n:
        return a
    return jnp.zeros((npad, npad), jnp.int8).at[:n, :n].set(a)


def _augment_weight(w, attn_l, attn_r, n_heads, out_dim):
    """Build [W_0|ones|W_1|ones|...|W@attn_l|W@attn_r] with an extra bottom row
    so el/er and the denominator ones-column all come from the single x@W matmul."""
    fin = w.shape[0]
    d = out_dim
    cols = []
    for h in range(n_heads):
        cols.append(w[:, h * d:(h + 1) * d])
        cols.append(jnp.zeros((fin, 1), w.dtype))     # ones column (driven by x's 1-col)
    w_l = jnp.concatenate(
        [w[:, h * d:(h + 1) * d] @ attn_l[h][:, None] for h in range(n_heads)], axis=1)
    w_r = jnp.concatenate(
        [w[:, h * d:(h + 1) * d] @ attn_r[h][:, None] for h in range(n_heads)], axis=1)
    top = jnp.concatenate(cols + [w_l, w_r], axis=1)          # (Fin, H*(D+1)+2H)
    bottom = jnp.zeros((1, top.shape[1]), w.dtype)
    for h in range(n_heads):
        bottom = bottom.at[0, h * (d + 1) + d].set(1.0)       # produces the ones column
    return jnp.concatenate([top, bottom], axis=0).astype(jnp.bfloat16)


# ----------------------------- layer wrapper -------------------------------- #

def gat_conv_pallas(x, adj_i8, w, attn_l, attn_r, bias, *, n_heads, out_dim,
                    apply_relu, npad, tile_d, tile_s):
    """One GATConv layer. adj_i8 is pre-padded int8 (npad, npad). Returns (N, H*D)."""
    n, fin = x.shape
    d, dp1 = out_dim, out_dim + 1
    hd = n_heads * d
    wcols = n_heads * dp1 + 2 * n_heads
    tile_p = tile_s
    assert adj_i8.shape == (npad, npad) and adj_i8.dtype == jnp.int8

    # x with an appended ones column (drives feat's denominator column); pad rows.
    xa = jnp.concatenate(
        [x.astype(jnp.bfloat16), jnp.ones((n, 1), jnp.bfloat16)], axis=1)
    xp = xa if npad == n else jnp.zeros((npad, fin + 1), jnp.bfloat16).at[:n].set(xa)
    w_aug = _augment_weight(w, attn_l, attn_r, n_heads, out_dim)
    bias_row = bias.astype(jnp.float32).reshape(1, hd)

    # ---- stage 1: fused fc projection + logits (single matmul) ----
    feat, el, er = pl.pallas_call(
        functools.partial(_gat_proj_kernel, n_heads=n_heads, out_dim=out_dim),
        grid=(npad // tile_p,),
        in_specs=[
            pl.BlockSpec((tile_p, fin + 1), lambda i: (i, 0)),
            pl.BlockSpec((fin + 1, wcols), lambda i: (0, 0)),
        ],
        out_specs=(
            pl.BlockSpec((n_heads, tile_p, dp1), lambda i: (0, i, 0)),
            pl.BlockSpec((tile_p, n_heads), lambda i: (i, 0)),
            pl.BlockSpec((tile_p, n_heads), lambda i: (i, 0)),
        ),
        out_shape=(
            jax.ShapeDtypeStruct((n_heads, npad, dp1), jnp.bfloat16),
            jax.ShapeDtypeStruct((npad, n_heads), jnp.float32),
            jax.ShapeDtypeStruct((npad, n_heads), jnp.float32),
        ),
        compiler_params=pltpu.CompilerParams(
            dimension_semantics=("parallel",),
            vmem_limit_bytes=_VMEM_LIMIT),
        cost_estimate=pl.CostEstimate(
            flops=int(2 * npad * (fin + 1) * wcols),
            transcendentals=0,
            bytes_accessed=int(xp.size * 2 + w_aug.size * 2
                               + npad * n_heads * dp1 * 2 + 2 * npad * n_heads * 4)),
    )(xp, w_aug)

    el_t = jnp.transpose(el)   # (H, npad): O(N*H) XLA op, once per layer

    # ---- stage 2: tiled edge-softmax + aggregation (online softmax) ----
    nblk_d, nblk_s = npad // tile_d, npad // tile_s
    out = pl.pallas_call(
        functools.partial(_gat_attn_kernel, n_heads=n_heads, out_dim=out_dim,
                          apply_relu=apply_relu),
        grid=(nblk_d, nblk_s),
        in_specs=[
            pl.BlockSpec((tile_d, n_heads), lambda i, j: (i, 0)),             # er
            pl.BlockSpec((n_heads, tile_s), lambda i, j: (0, j)),             # elT
            pl.BlockSpec((n_heads, tile_s, dp1), lambda i, j: (0, j, 0)),     # feat
            pl.BlockSpec((tile_d, tile_s), lambda i, j: (i, j)),              # adj int8
            pl.BlockSpec((1, hd), lambda i, j: (0, 0)),                       # bias
        ],
        out_specs=pl.BlockSpec((tile_d, hd), lambda i, j: (i, 0)),
        out_shape=jax.ShapeDtypeStruct((npad, hd), jnp.float32),
        scratch_shapes=[
            pltpu.VMEM((n_heads, tile_d, 1), jnp.float32),      # running max
            pltpu.VMEM((n_heads, tile_d, dp1), jnp.float32),    # acc (+denom column)
        ],
        compiler_params=pltpu.CompilerParams(
            dimension_semantics=("parallel", "arbitrary"),
            vmem_limit_bytes=_VMEM_LIMIT),
        cost_estimate=pl.CostEstimate(
            flops=int(2 * npad * npad * n_heads * dp1 + 7 * npad * npad * n_heads),
            transcendentals=int(npad * npad * n_heads),
            bytes_accessed=int(npad * npad                     # adj int8
                               + nblk_d * npad * n_heads * dp1 * 2
                               + npad * hd * 4)),
    )(er, el_t, feat, adj_i8, bias_row)

    return out[:n]   # (N, H*D), head-major within rows == torch flatten(1)


# ----------------------------- pure-JAX reference --------------------------- #

def gat_conv_ref(x, adj, w, attn_l, attn_r, bias, *, n_heads, out_dim, apply_relu):
    """Reference with the same bf16 operand quantization as the kernel. Returns (N, H*D)."""
    n = x.shape[0]
    d = out_dim
    xb = x.astype(jnp.bfloat16)
    feat = jnp.dot(xb, w.astype(jnp.bfloat16),
                   preferred_element_type=jnp.float32).reshape(n, n_heads, d)
    w_l = jnp.concatenate(
        [w[:, h * d:(h + 1) * d] @ attn_l[h][:, None] for h in range(n_heads)], axis=1)
    w_r = jnp.concatenate(
        [w[:, h * d:(h + 1) * d] @ attn_r[h][:, None] for h in range(n_heads)], axis=1)
    el = jnp.dot(xb, w_l.astype(jnp.bfloat16), preferred_element_type=jnp.float32)  # src
    er = jnp.dot(xb, w_r.astype(jnp.bfloat16), preferred_element_type=jnp.float32)  # dst
    e = er[:, None, :] + el[None, :, :]                         # (Ndst, Nsrc, H)
    e = jnp.maximum(e, 0.2 * e)                                 # LeakyReLU(0.2)
    mask = (adj != 0)[:, :, None]
    e = jnp.where(mask, e, -1e30)
    e_max = jnp.max(e, axis=1, keepdims=True)
    p = jnp.where(mask, jnp.exp(e - e_max), 0.0)
    p_q = p.astype(jnp.bfloat16).astype(jnp.float32)
    feat_q = feat.astype(jnp.bfloat16).astype(jnp.float32)
    denom = jnp.maximum(p_q.sum(axis=1), 1e-20)                 # (N, H)
    agg = jnp.einsum("vsh,shd->vhd", p_q, feat_q)
    rst = agg / denom[:, :, None] + bias[None, :, :]
    if apply_relu:
        rst = jnp.maximum(rst, 0.0)
    return rst.reshape(n, n_heads * d)


# ----------------------------- model --------------------------------------- #

class GATPallas:
    def __init__(self, key, in_feats, n_hidden, n_classes, n_layers, n_heads):
        assert len(n_heads) == n_layers
        assert n_heads[-1] == 1
        self.n_layers = n_layers
        self.n_hidden = n_hidden
        self.n_classes = n_classes
        self.n_heads = n_heads
        self.params = []
        self.dims = []
        for i in range(n_layers):
            in_dim = in_feats if i == 0 else n_hidden * n_heads[i - 1]
            out_dim = n_classes if i == n_layers - 1 else n_hidden
            h = n_heads[i]
            key, kw, kl, kr = jax.random.split(key, 4)
            # xavier-normal-ish deterministic init (gain=sqrt(2), as dgl GATConv)
            std_w = (2.0 * 2.0 / (in_dim + h * out_dim)) ** 0.5
            std_a = (2.0 * 2.0 / (1 + out_dim)) ** 0.5
            w = std_w * jax.random.normal(kw, (in_dim, h * out_dim), dtype=jnp.float32)
            al = std_a * jax.random.normal(kl, (h, out_dim), dtype=jnp.float32)
            ar = std_a * jax.random.normal(kr, (h, out_dim), dtype=jnp.float32)
            b = jnp.zeros((h, out_dim), dtype=jnp.float32)
            self.params.append((w, al, ar, b))
            self.dims.append((h, out_dim))

    def forward(self, blocks, x):
        n = x.shape[0]
        npad, tile_d, tile_s = _choose_tiles(n)
        # pad + int8-convert each DISTINCT adjacency once per forward (hoisted).
        cache, prepped = {}, []
        for adj in blocks:
            k = id(adj)
            if k not in cache:
                cache[k] = _prepare_adj(adj, npad)
            prepped.append(cache[k])
        h = x
        for i, (adj_i8, (w, al, ar, b)) in enumerate(zip(prepped, self.params)):
            heads, out_dim = self.dims[i]
            apply_relu = i != self.n_layers - 1
            out = gat_conv_pallas(h, adj_i8, w, al, ar, b, n_heads=heads,
                                  out_dim=out_dim, apply_relu=apply_relu,
                                  npad=npad, tile_d=tile_d, tile_s=tile_s)
            if i == self.n_layers - 1:
                h = out.reshape(n, heads, out_dim).mean(axis=1)   # h.mean(1)
            else:
                h = out                                           # == h.flatten(1)
        return h

    def forward_ref(self, blocks, x):
        n = x.shape[0]
        h = x
        for i, (adj, (w, al, ar, b)) in enumerate(zip(blocks, self.params)):
            heads, out_dim = self.dims[i]
            apply_relu = i != self.n_layers - 1
            out = gat_conv_ref(h, adj, w, al, ar, b, n_heads=heads,
                               out_dim=out_dim, apply_relu=apply_relu)
            if i == self.n_layers - 1:
                h = out.reshape(n, heads, out_dim).mean(axis=1)
            else:
                h = out
        return h


# ----------------------------- main ----------------------------------------- #

if __name__ == "__main__":
    key = jax.random.PRNGKey(0)
    # N=300 is deliberately not a multiple of 128 so padding + multi-dst-tile
    # online softmax (npad=384 -> 3 dst tiles x 1 src tile) are exercised.
    N, in_feats, n_hidden, n_classes = 300, 64, 32, 8
    n_layers, n_heads = 2, [2, 1]

    key, kx, ka, kp = jax.random.split(key, 4)
    x = jax.random.normal(kx, (N, in_feats), dtype=jnp.float32)
    adj = (jax.random.uniform(ka, (N, N)) < 0.3).astype(jnp.float32)
    adj = jnp.maximum(adj, jnp.eye(N, dtype=jnp.float32))   # self loops
    blocks = [adj, adj]   # full-neighbor blocks, one per layer

    model = GATPallas(kp, in_feats, n_hidden, n_classes, n_layers, n_heads)

    out = jax.block_until_ready(model.forward(blocks, x))
    ref = model.forward_ref(blocks, x)

    assert out.shape == (N, n_classes), out.shape
    max_err = float(jnp.max(jnp.abs(out - ref)))
    assert jnp.allclose(out, ref, atol=2e-2, rtol=2e-2), f"mismatch: {max_err}"

    print("KERNEL_OK")
</pallas_src>

<mosaic_0001>
module attributes {stable_mosaic.version = 11 : i64} {
  func.func @_gat_proj_kernel(%arg0: i32, %arg1: memref<384x65xbf16, #tpu.memory_space<vmem>>, %arg2: memref<65x70xbf16, #tpu.memory_space<vmem>>, %arg3: memref<2x384x33xbf16, #tpu.memory_space<vmem>>, %arg4: memref<384x2xf32, #tpu.memory_space<vmem>>, %arg5: memref<384x2xf32, #tpu.memory_space<vmem>>) attributes {dimension_semantics = [#tpu.dimension_semantics<parallel>], iteration_bounds = array<i64: 1>, scalar_prefetch = 0 : i64, scratch_operands = 0 : i64, tpu.core_type = #tpu.core_type<tc>, window_params = [{transform_indices = @transform_0, window_bounds = array<i64: 384, 65>}, {pipeline_mode = #tpu.pipeline_mode<synchronous>, transform_indices = @transform_1, window_bounds = array<i64: 65, 70>}, {transform_indices = @transform_2, window_bounds = array<i64: 2, 384, 33>}, {transform_indices = @transform_3, window_bounds = array<i64: 384, 2>}, {transform_indices = @transform_4, window_bounds = array<i64: 384, 2>}]} {
    %c0 = arith.constant 0 : index
    %c0_0 = arith.constant 0 : index
    %0 = vector.load %arg1[%c0, %c0_0] : memref<384x65xbf16, #tpu.memory_space<vmem>>, vector<384x65xbf16>
    %c0_1 = arith.constant 0 : index
    %c0_2 = arith.constant 0 : index
    %1 = vector.load %arg2[%c0_1, %c0_2] : memref<65x70xbf16, #tpu.memory_space<vmem>>, vector<65x70xbf16>
    %cst = arith.constant dense<0.000000e+00> : vector<384x70xf32>
    %2 = tpu.matmul %0, %1, %cst {dimension_numbers = #tpu.dot_dimension_numbers<[1], [0], [0], [1], [0, 0, 1, 1], [], []>} : vector<384x65xbf16>, vector<65x70xbf16>, vector<384x70xf32> -> vector<384x70xf32>
    %3 = vector.extract_strided_slice %2 {offsets = [0, 0], sizes = [384, 33], strides = [1, 1]} : vector<384x70xf32> to vector<384x33xf32>
    %4 = arith.truncf %3 : vector<384x33xf32> to vector<384x33xbf16>
    %c0_3 = arith.constant 0 : index
    %c0_4 = arith.constant 0 : index
    %c0_5 = arith.constant 0 : index
    %5 = vector.load %arg3[%c0_3, %c0_4, %c0_5] : memref<2x384x33xbf16, #tpu.memory_space<vmem>>, vector<1x384x33xbf16>
    %6 = vector.shape_cast %5 : vector<1x384x33xbf16> to vector<384x33xbf16>
    %7 = vector.shape_cast %4 : vector<384x33xbf16> to vector<1x384x33xbf16>
    tpu.vector_store %arg3[%c0_3, %c0_4, %c0_5], %7 {strides = array<i32>} : memref<2x384x33xbf16, #tpu.memory_space<vmem>>, vector<1x384x33xbf16>,
    %8 = vector.extract_strided_slice %2 {offsets = [0, 33], sizes = [384, 33], strides = [1, 1]} : vector<384x70xf32> to vector<384x33xf32>
    %9 = arith.truncf %8 : vector<384x33xf32> to vector<384x33xbf16>
    %c1 = arith.constant 1 : index
    %c0_6 = arith.constant 0 : index
    %c0_7 = arith.constant 0 : index
    %10 = vector.load %arg3[%c1, %c0_6, %c0_7] : memref<2x384x33xbf16, #tpu.memory_space<vmem>>, vector<1x384x33xbf16>
    %11 = vector.shape_cast %10 : vector<1x384x33xbf16> to vector<384x33xbf16>
    %12 = vector.shape_cast %9 : vector<384x33xbf16> to vector<1x384x33xbf16>
    tpu.vector_store %arg3[%c1, %c0_6, %c0_7], %12 {strides = array<i32>} : memref<2x384x33xbf16, #tpu.memory_space<vmem>>, vector<1x384x33xbf16>,
    %13 = vector.extract_strided_slice %2 {offsets = [0, 66], sizes = [384, 2], strides = [1, 1]} : vector<384x70xf32> to vector<384x2xf32>
    %c0_8 = arith.constant 0 : index
    %c0_9 = arith.constant 0 : index
    %14 = vector.load %arg4[%c0_8, %c0_9] : memref<384x2xf32, #tpu.memory_space<vmem>>, vector<384x2xf32>
    tpu.vector_store %arg4[%c0_8, %c0_9], %13 {strides = array<i32>} : memref<384x2xf32, #tpu.memory_space<vmem>>, vector<384x2xf32>,
    %15 = vector.extract_strided_slice %2 {offsets = [0, 68], sizes = [384, 2], strides = [1, 1]} : vector<384x70xf32> to vector<384x2xf32>
    %c0_10 = arith.constant 0 : index
    %c0_11 = arith.constant 0 : index
    %16 = vector.load %arg5[%c0_10, %c0_11] : memref<384x2xf32, #tpu.memory_space<vmem>>, vector<384x2xf32>
    tpu.vector_store %arg5[%c0_10, %c0_11], %15 {strides = array<i32>} : memref<384x2xf32, #tpu.memory_space<vmem>>, vector<384x2xf32>,
    return
  }
  func.func @transform_0(%arg0: i32) -> (i32, i32) {
    %c0_i32 = arith.constant 0 : i32
    %c0_i32_0 = arith.constant 0 : i32
    return %arg0, %c0_i32 : i32, i32
  }
  func.func @transform_1(%arg0: i32) -> (i32, i32) {
    %c0_i32 = arith.constant 0 : i32
    %c0_i32_0 = arith.constant 0 : i32
    %c0_i32_1 = arith.constant 0 : i32
    return %c0_i32, %c0_i32_0 : i32, i32
  }
  func.func @transform_2(%arg0: i32) -> (i32, i32, i32) {
    %c0_i32 = arith.constant 0 : i32
    %c0_i32_0 = arith.constant 0 : i32
    %c0_i32_1 = arith.constant 0 : i32
    return %c0_i32, %arg0, %c0_i32_0 : i32, i32, i32
  }
  func.func @transform_3(%arg0: i32) -> (i32, i32) {
    %c0_i32 = arith.constant 0 : i32
    %c0_i32_0 = arith.constant 0 : i32
    return %arg0, %c0_i32 : i32, i32
  }
  func.func @transform_4(%arg0: i32) -> (i32, i32) {
    %c0_i32 = arith.constant 0 : i32
    %c0_i32_0 = arith.constant 0 : i32
    return %arg0, %c0_i32 : i32, i32
  }
}

</mosaic_0001>

<bundles_post_ra>
// kernel: tpu_custom_call.1
= control target key start
LH: loop header
LB: loop body
LE: loop exit
PB: predicated region body
PF: predicated region fallthrough
CT: control target
= control target key end

     0   :  { %vm219_vm0 = vcmask 531456   ;;  %vm292_vm1 = vcmask 1040384   ;;  %v1729_v7 = vmov 0   ;;  %vm715_vm2 = vcmask 265216   ;;  %s1730_s19 = smov 62   ;;  %s1731_s21 = smov 95   ;;  %s3233_s1 = inlined_call_operand.vmem [shape: bf16[65,70], index: 1, kind: input, shape index: {}]   ;;  %s3234_s0 = inlined_call_operand.vmem [shape: bf16[384,65], index: 0, kind: input, shape index: {}]   ;;  %s3235_s2 = inlined_call_operand.vmem [shape: bf16[2,384,33], index: 2, kind: output, shape index: {0}]   ;;  %s3236_s3 = inlined_call_operand.vmem [shape: f32[384,2], index: 3, kind: output, shape index: {1}]   ;;  %s3237_s4 = inlined_call_operand.vmem [shape: f32[384,2], index: 4, kind: output, shape index: {2}]  }
   0x1   :  { %v1700_v0 = vld [vmem:[%s3233_s1] sm:$0xff]   ;;  %v1701_v1 = vld [vmem:[%s3233_s1 + $0x8] sm:$0xff]   ;;  %v1702_v2 = vld [vmem:[%s3233_s1 + $0x10] sm:$0xff]   ;;  %v294_v8 = vsel %vm292_vm1, 65535, %v1729_v7  ;;  %s1732_s9 = smov 60   ;;  %vm1149_vm3 = vcmask 15360  }
   0x2   :  { %1628 = vmatprep.subr.bf16.mxu0 %v1700_v0  ;;  %1686 = vmatprep.subr.bf16.mxu1 %v1700_v0  ;;  %v1705_v3 = vld [vmem:[%s3234_s0] sm:$0xff]   ;;  %v1703_v6 = vld [vmem:[%s3233_s1 + $0x18] sm:$0xff]   ;;  %v1706_v10 = vld [vmem:[%s3234_s0 + $0x8] sm:$0xff]  }
   0x3   :  { %1629 = vmatpush3.bf16.msra.mxu0 %v1700_v0  ;;  %1691 = vmatpush3.bf16.msra.mxu1 %v1700_v0  ;;  %v1704_v4 = vld [vmem:[%s3233_s1 + $0x20] ss:$0 sps:$4 sm:$0x11]   ;;  %v1708_v11 = vld [vmem:[%s3234_s0 + $0x68] sm:$0xff]   ;;  %v1709_v12 = vld [vmem:[%s3234_s0 + $0x10] sm:$0xff]  }
   0x4   :  { %1630 = vmatprep.subr.bf16.mxu0 %v1701_v1  ;;  %1687 = vmatprep.subr.bf16.mxu1 %v1701_v1  ;;  %v1707_v5 = vld [vmem:[%s3234_s0 + $0x60] sm:$0xff]   ;;  %v296_v9 = vand.u32 %v1704_v4, %v294_v8  ;;  %v1711_v13 = vld [vmem:[%s3234_s0 + $0x70] sm:$0xff]   ;;  %v1710_v14 = vld [vmem:[%s3234_s0 + $0x18] sm:$0xff]  }
   0x5   :  { %1638 = vmatprep.mubr.msk.bf16.mxu0 %vm219_vm0, %v1705_v3  ;;  %1662 = vmatprep.mubr.msk.bf16.mxu1 %vm219_vm0, %v1707_v5  ;;  %v1712_v15 = vld [vmem:[%s3234_s0 + $0x78] sm:$0xff]   ;;  %v1713_v16 = vld [vmem:[%s3234_s0 + $0x20] sm:$0xff]   ;;  %v1714_v18 = vld [vmem:[%s3234_s0 + $0x28] sm:$0xff]  }
   0x6   :  { %v1715_v17 = vld [vmem:[%s3234_s0 + $0x80] sm:$0xff]   ;;  %v1716_v19 = vld [vmem:[%s3234_s0 + $0x88] sm:$0xff]   ;;  %v1717_v20 = vld [vmem:[%s3234_s0 + $0x30] sm:$0xff]  }
   0x7   :  { %1631 = vmatpush3.bf16.msra.mxu0 %v1701_v1  ;;  %1692 = vmatpush3.bf16.msra.mxu1 %v1701_v1  ;;  %v1719_v21 = vld [vmem:[%s3234_s0 + $0x90] sm:$0xff]   ;;  %v1718_v22 = vld [vmem:[%s3234_s0 + $0x38] sm:$0xff]   ;;  %v1721_v24 = vld [vmem:[%s3234_s0 + $0x40] sm:$0xff]  }
   0x8   :  { %1632 = vmatprep.subr.bf16.mxu0 %v1702_v2  ;;  %1688 = vmatprep.subr.bf16.mxu1 %v1702_v2  ;;  %v1720_v23 = vld [vmem:[%s3234_s0 + $0x98] sm:$0xff]   ;;  %v1723_v25 = vld [vmem:[%s3234_s0 + $0xa0] sm:$0xff]   ;;  %v1722_v26 = vld [vmem:[%s3234_s0 + $0x48] sm:$0xff]  }
   0x9   :  { %v1724_v27 = vld [vmem:[%s3234_s0 + $0xa8] sm:$0xff]   ;;  %v1725_v28 = vld [vmem:[%s3234_s0 + $0x50] sm:$0xff]   ;;  %v1726_v29 = vld [vmem:[%s3234_s0 + $0x58] sm:$0xff]  }
   0xa   :  { %v1727_v30 = vld [vmem:[%s3234_s0 + $0xb0] sm:$0xff]   ;;  %v1728_v31 = vld [vmem:[%s3234_s0 + $0xb8] sm:$0xff]  }
   0xb   :  { %1633 = vmatpush3.bf16.msra.mxu0 %v1702_v2  ;;  %1693 = vmatpush3.bf16.msra.mxu1 %v1702_v2 }
   0xc   :  { %1634 = vmatprep.subr.bf16.mxu0 %v1703_v6  ;;  %1689 = vmatprep.subr.bf16.mxu1 %v1703_v6 }
   0xf   :  { %1635 = vmatpush3.bf16.msra.mxu0 %v1703_v6  ;;  %1694 = vmatpush3.bf16.msra.mxu1 %v1703_v6 }
  0x10   :  { %1636 = vmatprep.subr.bf16.mxu0 %v296_v9  ;;  %1690 = vmatprep.subr.bf16.mxu1 %v296_v9 }
  0x13   :  { %1637 = vmatpush3.bf16.msra.mxu0 %v296_v9  ;;  %1695 = vmatpush3.bf16.msra.mxu1 %v296_v9 }
  0x16   :  { %1639 = vmatmul.mubr.msk.bf16.vlgmr.msra.gmra.mrb[0].mxu0 %vm219_vm0, %v1706_v10  ;;  %1663 = vmatmul.mubr.msk.bf16.vlgmr.msra.gmra.mrb[0].mxu1 %vm219_vm0, %v1708_v11 }
  0x17   :  { %1642 = vmatprep.mubr.msk.bf16.mxu0 %vm219_vm0, %v1709_v12  ;;  %1666 = vmatprep.mubr.msk.bf16.mxu1 %vm219_vm0, %v1711_v13 }
  0x1e   :  { %1643 = vmatmul.mubr.msk.bf16.gmra.mrb[4].mxu0 %vm219_vm0, %v1710_v14  ;;  %1667 = vmatmul.mubr.msk.bf16.gmra.mrb[4].mxu1 %vm219_vm0, %v1712_v15 }
  0x1f   :  { %1646 = vmatprep.mubr.msk.bf16.mxu0 %vm219_vm0, %v1713_v16  ;;  %1670 = vmatprep.mubr.msk.bf16.mxu1 %vm219_vm0, %v1715_v17 }
  0x26   :  { %1647 = vmatmul.mubr.msk.bf16.gmra.mrb[8].mxu0 %vm219_vm0, %v1714_v18  ;;  %1671 = vmatmul.mubr.msk.bf16.gmra.mrb[8].mxu1 %vm219_vm0, %v1716_v19 }
  0x27   :  { %1650 = vmatprep.mubr.msk.bf16.mxu0 %vm219_vm0, %v1717_v20  ;;  %1674 = vmatprep.mubr.msk.bf16.mxu1 %vm219_vm0, %v1719_v21 }
  0x2e   :  { %1651 = vmatmul.mubr.msk.bf16.gmra.mrb[12].mxu0 %vm219_vm0, %v1718_v22  ;;  %1675 = vmatmul.mubr.msk.bf16.gmra.mrb[12].mxu1 %vm219_vm0, %v1720_v23 }
  0x2f   :  { %1654 = vmatprep.mubr.msk.bf16.mxu0 %vm219_vm0, %v1721_v24  ;;  %1678 = vmatprep.mubr.msk.bf16.mxu1 %vm219_vm0, %v1723_v25 }
  0x36   :  { %1655 = vmatmul.mubr.msk.bf16.gmra.mrb[16].mxu0 %vm219_vm0, %v1722_v26  ;;  %1679 = vmatmul.mubr.msk.bf16.gmra.mrb[16].mxu1 %vm219_vm0, %v1724_v27 }
  0x37   :  { %1658 = vmatprep.mubr.msk.bf16.mxu0 %vm219_vm0, %v1725_v28  ;;  %1682 = vmatprep.mubr.msk.bf16.mxu1 %vm219_vm0, %v1727_v30 }
  0x3e   :  { %1659 = vmatmul.mubr.msk.bf16.gmra.mrb[20].mxu0 %vm219_vm0, %v1726_v29  ;;  %1683 = vmatmul.mubr.msk.bf16.gmra.mrb[20].mxu1 %vm219_vm0, %v1728_v31 }
  0xe9   :  { %v1640_v32 = vpop.f32.mrb[0].mxu0  ;;  %v1664_v33 = vpop.f32.mrb[0].mxu1 }
  0xea   :  { %1009 = vrot.lane.b32.xlu0 %v1640_v32, %s1730_s19  ;;  %v1870_v34 = vpop.f32.mrb[1].mxu0  ;;  %v1872_v35 = vpack.c.bf16 %v1664_v33, %v1664_v33  ;;  %v1553_v36 = vpack.c.bf16 %v1640_v32, %v1640_v32  ;;  %v1874_v37 = vpop.f32.mrb[1].mxu1 }
  0xeb   :  { %v1878_v38 = vpack.c.bf16 %v1870_v34, %v1870_v34  ;;  %v1641_v39 = vpop.f32.mrb[2].mxu0  ;;  %v1882_v40 = vpack.c.bf16 %v1874_v37, %v1874_v37  ;;  %v1665_v41 = vpop.f32.mrb[2].mxu1 }
  0xec   :  { %v1884_v42 = vpack.c.bf16 %v1641_v39, %v1641_v39  ;;  %742 = vst.msk [vmem:[%s3235_s2 + $0x68] sm:$0xf] %vm715_vm2, %v1872_v35  ;;  %768 = vrot.lane.b32.xlu1 %v1553_v36, %s1731_s21  ;;  %718 = vst.msk [vmem:[%s3235_s2 + $0x8] sm:$0xf] %vm715_vm2, %v1553_v36  ;;  %v1896_v43 = vpop.f32.mrb[3].mxu0  ;;  %v1898_v44 = vpack.c.bf16 %v1665_v41, %v1665_v41  ;;  %v1900_v45 = vpop.f32.mrb[3].mxu1 }
  0xed   :  { %716 = vst.msk [vmem:[%s3235_s2] sm:$0xf] %vm715_vm2, %v1878_v38  ;;  %v1909_v46 = vpack.c.bf16 %v1896_v43, %v1896_v43  ;;  %740 = vst.msk [vmem:[%s3235_s2 + $0x60] sm:$0xf] %vm715_vm2, %v1882_v40  ;;  %v1918_v47 = vpack.c.bf16 %v1900_v45, %v1900_v45 }
  0xee   :  { %719 = vst.msk [vmem:[%s3235_s2 + $0xc] sm:$0xf] %vm715_vm2, %v1884_v42  ;;  %743 = vst.msk [vmem:[%s3235_s2 + $0x6c] sm:$0xf] %vm715_vm2, %v1898_v44  ;;  %1057 = vrot.lane.b32.xlu0 %v1664_v33, %s1730_s19 }
  0xef   :  { %717 = vst.msk [vmem:[%s3235_s2 + $0x4] sm:$0xf] %vm715_vm2, %v1909_v46  ;;  %741 = vst.msk [vmem:[%s3235_s2 + $0x64] sm:$0xf] %vm715_vm2, %v1918_v47 }
  0xf0   :  { %1011 = vrot.lane.b32.xlu1 %v1641_v39, %s1730_s19 }
  0xf1   :  { %v1942_v48 = vpop.f32.mrb[4].mxu0  ;;  %v1944_v49 = vpop.f32.mrb[4].mxu1 }
  0xf2   :  { %1202 = vrot.lane.b32.xlu0 %v1640_v32, %s1732_s9  ;;  %v1949_v50 = vpack.c.bf16 %v1942_v48, %v1942_v48  ;;  %v1951_v51 = vpop.f32.mrb[5].mxu0  ;;  %v1955_v52 = vpack.c.bf16 %v1944_v49, %v1944_v49  ;;  %v1957_v53 = vpop.f32.mrb[5].mxu1 }
  0xf3   :  { %v1961_v54 = vpack.c.bf16 %v1951_v51, %v1951_v51  ;;  %v1963_v55 = vpop.f32.mrb[6].mxu0  ;;  %v1967_v56 = vpack.c.bf16 %v1957_v53, %v1957_v53  ;;  %v1969_v57 = vpop.f32.mrb[6].mxu1 }
  0xf4   :  { %1059 = vrot.lane.b32.xlu1 %v1665_v41, %s1730_s19  ;;  %722 = vst.msk [vmem:[%s3235_s2 + $0x18] sm:$0xf] %vm715_vm2, %v1949_v50  ;;  %v1979_v58 = vpack.c.bf16 %v1963_v55, %v1963_v55  ;;  %v1981_v59 = vpop.f32.mrb[7].mxu0  ;;  %746 = vst.msk [vmem:[%s3235_s2 + $0x78] sm:$0xf] %vm715_vm2, %v1955_v52  ;;  %v1990_v60 = vpack.c.bf16 %v1969_v57, %v1969_v57  ;;  %v1992_v61 = vpop.f32.mrb[7].mxu1 }
  0xf5   :  { %720 = vst.msk [vmem:[%s3235_s2 + $0x10] sm:$0xf] %vm715_vm2, %v1961_v54  ;;  %v2001_v62 = vpack.c.bf16 %v1981_v59, %v1981_v59  ;;  %744 = vst.msk [vmem:[%s3235_s2 + $0x70] sm:$0xf] %vm715_vm2, %v1967_v56  ;;  %v2010_v63 = vpack.c.bf16 %v1992_v61, %v1992_v61 }
  0xf6   :  { %1250 = vrot.lane.b32.xlu0 %v1664_v33, %s1732_s9  ;;  %723 = vst.msk [vmem:[%s3235_s2 + $0x1c] sm:$0xf] %vm715_vm2, %v1979_v58  ;;  %747 = vst.msk [vmem:[%s3235_s2 + $0x7c] sm:$0xf] %vm715_vm2, %v1990_v60 }
  0xf7   :  { %721 = vst.msk [vmem:[%s3235_s2 + $0x14] sm:$0xf] %vm715_vm2, %v2001_v62  ;;  %745 = vst.msk [vmem:[%s3235_s2 + $0x74] sm:$0xf] %vm715_vm2, %v2010_v63 }
  0xf8   :  { %1204 = vrot.lane.b32.xlu1 %v1641_v39, %s1732_s9 }
  0xf9   :  { %v2034_v0 = vpop.f32.mrb[8].mxu0  ;;  %v2036_v1 = vpop.f32.mrb[8].mxu1 }
  0xfa   :  { %1005 = vrot.lane.b32.xlu0 %v1870_v34, %s1730_s19  ;;  %v2042_v2 = vpack.c.bf16 %v2034_v0, %v2034_v0  ;;  %v2044_v3 = vpop.f32.mrb[9].mxu0  ;;  %v2048_v4 = vpack.c.bf16 %v2036_v1, %v2036_v1  ;;  %v2050_v5 = vpop.f32.mrb[9].mxu1 }
  0xfb   :  { %v2054_v6 = vpack.c.bf16 %v2044_v3, %v2044_v3  ;;  %v2056_v7 = vpop.f32.mrb[10].mxu0  ;;  %v2060_v8 = vpack.c.bf16 %v2050_v5, %v2050_v5  ;;  %v2062_v9 = vpop.f32.mrb[10].mxu1 }
  0xfc   :  { %1252 = vrot.lane.b32.xlu1 %v1665_v41, %s1732_s9  ;;  %726 = vst.msk [vmem:[%s3235_s2 + $0x28] sm:$0xf] %vm715_vm2, %v2042_v2  ;;  %v2072_v10 = vpack.c.bf16 %v2056_v7, %v2056_v7  ;;  %v2074_v11 = vpop.f32.mrb[11].mxu0  ;;  %750 = vst.msk [vmem:[%s3235_s2 + $0x88] sm:$0xf] %vm715_vm2, %v2048_v4  ;;  %v2083_v12 = vpack.c.bf16 %v2062_v9, %v2062_v9  ;;  %v2085_v13 = vpop.f32.mrb[11].mxu1 }
  0xfd   :  { %724 = vst.msk [vmem:[%s3235_s2 + $0x20] sm:$0xf] %vm715_vm2, %v2054_v6  ;;  %v2094_v14 = vpack.c.bf16 %v2074_v11, %v2074_v11  ;;  %748 = vst.msk [vmem:[%s3235_s2 + $0x80] sm:$0xf] %vm715_vm2, %v2060_v8  ;;  %v2103_v15 = vpack.c.bf16 %v2085_v13, %v2085_v13 }
  0xfe   :  { %1053 = vrot.lane.b32.xlu0 %v1874_v37, %s1730_s19  ;;  %727 = vst.msk [vmem:[%s3235_s2 + $0x2c] sm:$0xf] %vm715_vm2, %v2072_v10  ;;  %751 = vst.msk [vmem:[%s3235_s2 + $0x8c] sm:$0xf] %vm715_vm2, %v2083_v12 }
  0xff   :  { %725 = vst.msk [vmem:[%s3235_s2 + $0x24] sm:$0xf] %vm715_vm2, %v2094_v14  ;;  %749 = vst.msk [vmem:[%s3235_s2 + $0x84] sm:$0xf] %vm715_vm2, %v2103_v15 }
 0x100   :  { %1007 = vrot.lane.b32.xlu1 %v1896_v43, %s1730_s19 }
 0x101   :  { %v2129_v16 = vpop.f32.mrb[12].mxu0  ;;  %v2131_v17 = vpop.f32.mrb[12].mxu1 }
 0x102   :  { %1198 = vrot.lane.b32.xlu0 %v1870_v34, %s1732_s9  ;;  %v2137_v18 = vpack.c.bf16 %v2129_v16, %v2129_v16  ;;  %v2139_v19 = vpop.f32.mrb[13].mxu0  ;;  %v2143_v20 = vpack.c.bf16 %v2131_v17, %v2131_v17  ;;  %v2145_v21 = vpop.f32.mrb[13].mxu1 }
 0x103   :  { %v2149_v22 = vpack.c.bf16 %v2139_v19, %v2139_v19  ;;  %v2151_v23 = vpop.f32.mrb[14].mxu0  ;;  %v2155_v24 = vpack.c.bf16 %v2145_v21, %v2145_v21  ;;  %v2157_v25 = vpop.f32.mrb[14].mxu1 }
 0x104   :  { %1055 = vrot.lane.b32.xlu1 %v1900_v45, %s1730_s19  ;;  %730 = vst.msk [vmem:[%s3235_s2 + $0x38] sm:$0xf] %vm715_vm2, %v2137_v18  ;;  %v2168_v26 = vpack.c.bf16 %v2151_v23, %v2151_v23  ;;  %v2170_v27 = vpop.f32.mrb[15].mxu0  ;;  %754 = vst.msk [vmem:[%s3235_s2 + $0x98] sm:$0xf] %vm715_vm2, %v2143_v20  ;;  %v2179_v28 = vpack.c.bf16 %v2157_v25, %v2157_v25  ;;  %v2181_v29 = vpop.f32.mrb[15].mxu1 }
 0x105   :  { %728 = vst.msk [vmem:[%s3235_s2 + $0x30] sm:$0xf] %vm715_vm2, %v2149_v22  ;;  %v2190_v30 = vpack.c.bf16 %v2170_v27, %v2170_v27  ;;  %752 = vst.msk [vmem:[%s3235_s2 + $0x90] sm:$0xf] %vm715_vm2, %v2155_v24  ;;  %v2199_v31 = vpack.c.bf16 %v2181_v29, %v2181_v29 }
 0x106   :  { %1246 = vrot.lane.b32.xlu0 %v1874_v37, %s1732_s9  ;;  %731 = vst.msk [vmem:[%s3235_s2 + $0x3c] sm:$0xf] %vm715_vm2, %v2168_v26  ;;  %755 = vst.msk [vmem:[%s3235_s2 + $0x9c] sm:$0xf] %vm715_vm2, %v2179_v28 }
 0x107   :  { %729 = vst.msk [vmem:[%s3235_s2 + $0x34] sm:$0xf] %vm715_vm2, %v2190_v30  ;;  %753 = vst.msk [vmem:[%s3235_s2 + $0x94] sm:$0xf] %vm715_vm2, %v2199_v31 }
 0x108   :  { %1200 = vrot.lane.b32.xlu1 %v1896_v43, %s1732_s9 }
 0x109   :  { %v2255_v32 = vpop.f32.mrb[16].mxu0  ;;  %v2282_v39 = vpop.f32.mrb[16].mxu1 }
 0x10a   :  { %816 = vrot.lane.b32.xlu0 %v1872_v35, %s1731_s21  ;;  %v2259_v33 = vpack.c.bf16 %v2255_v32, %v2255_v32  ;;  %v2261_v34 = vpop.f32.mrb[17].mxu0  ;;  %v2297_v41 = vpack.c.bf16 %v2282_v39, %v2282_v39 }
 0x10b   :  { %v2267_v35 = vpack.c.bf16 %v2261_v34, %v2261_v34  ;;  %v2269_v36 = vpop.f32.mrb[18].mxu0 }
 0x10c   :  { %1248 = vrot.lane.b32.xlu1 %v1900_v45, %s1732_s9  ;;  %734 = vst.msk [vmem:[%s3235_s2 + $0x48] sm:$0xf] %vm715_vm2, %v2259_v33  ;;  %v2278_v37 = vpack.c.bf16 %v2269_v36, %v2269_v36  ;;  %758 = vst.msk [vmem:[%s3235_s2 + $0xa8] sm:$0xf] %vm715_vm2, %v2297_v41 }
 0x10d   :  { %732 = vst.msk [vmem:[%s3235_s2 + $0x40] sm:$0xf] %vm715_vm2, %v2267_v35 }
 0x10e   :  { %764 = vrot.lane.b32.xlu0 %v1878_v38, %s1731_s21  ;;  %v2280_v38 = vpop.f32.mrb[19].mxu0  ;;  %735 = vst.msk [vmem:[%s3235_s2 + $0x4c] sm:$0xf] %vm715_vm2, %v2278_v37 }
 0x110   :  { %770 = vrot.lane.b32.xlu1 %v1884_v42, %s1731_s21  ;;  %v2304_v42 = vpop.f32.mrb[17].mxu1 }
 0x111   :  { %v2320_v43 = vpack.c.bf16 %v2304_v42, %v2304_v42 }
 0x112   :  { %812 = vrot.lane.b32.xlu0 %v1882_v40, %s1731_s21  ;;  %v2293_v40 = vpack.c.bf16 %v2280_v38, %v2280_v38 }
 0x113   :  { %756 = vst.msk [vmem:[%s3235_s2 + $0xa0] sm:$0xf] %vm715_vm2, %v2320_v43 }
 0x114   :  { %818 = vrot.lane.b32.xlu1 %v1898_v44, %s1731_s21  ;;  %733 = vst.msk [vmem:[%s3235_s2 + $0x44] sm:$0xf] %vm715_vm2, %v2293_v40  ;;  %v2322_v44 = vpop.f32.mrb[18].mxu1 }
 0x115   :  { %v2326_v45 = vpack.c.bf16 %v2322_v44, %v2322_v44 }
 0x116   :  { %766 = vrot.lane.b32.xlu0 %v1909_v46, %s1731_s21  ;;  %v2328_v46 = vpop.f32.mrb[19].mxu1 }
 0x117   :  { %759 = vst.msk [vmem:[%s3235_s2 + $0xac] sm:$0xf] %vm715_vm2, %v2326_v45 }
 0x118   :  { %814 = vrot.lane.b32.xlu1 %v1918_v47, %s1731_s21  ;;  %v2339_v47 = vpack.c.bf16 %v2328_v46, %v2328_v46 }
 0x11a   :  { %1017 = vrot.lane.b32.xlu0 %v1942_v48, %s1730_s19  ;;  %757 = vst.msk [vmem:[%s3235_s2 + $0xa4] sm:$0xf] %vm715_vm2, %v2339_v47 }
 0x11c   :  { %1019 = vrot.lane.b32.xlu1 %v1963_v55, %s1730_s19 }
 0x11e   :  { %1065 = vrot.lane.b32.xlu0 %v1944_v49, %s1730_s19 }
 0x120   :  { %1067 = vrot.lane.b32.xlu1 %v1969_v57, %s1730_s19 }
 0x122   :  { %1210 = vrot.lane.b32.xlu0 %v1942_v48, %s1732_s9  ;;  %v2391_v48 = vpop.f32.mrb[20].mxu0 }
 0x124   :  { %1212 = vrot.lane.b32.xlu1 %v1963_v55, %s1732_s9 }
 0x126   :  { %1258 = vrot.lane.b32.xlu0 %v1944_v49, %s1732_s9  ;;  %v2395_v49 = vpack.c.bf16 %v2391_v48, %v2391_v48 }
 0x128   :  { %1260 = vrot.lane.b32.xlu1 %v1969_v57, %s1732_s9  ;;  %738 = vst.msk [vmem:[%s3235_s2 + $0x58] sm:$0xf] %vm715_vm2, %v2395_v49 }
 0x12a   :  { %1013 = vrot.lane.b32.xlu0 %v1951_v51, %s1730_s19 }
 0x12c   :  { %1015 = vrot.lane.b32.xlu1 %v1981_v59, %s1730_s19 }
 0x12e   :  { %1061 = vrot.lane.b32.xlu0 %v1957_v53, %s1730_s19 }
 0x130   :  { %1063 = vrot.lane.b32.xlu1 %v1992_v61, %s1730_s19 }
 0x132   :  { %1206 = vrot.lane.b32.xlu0 %v1951_v51, %s1732_s9 }
 0x134   :  { %1208 = vrot.lane.b32.xlu1 %v1981_v59, %s1732_s9 }
 0x136   :  { %1254 = vrot.lane.b32.xlu0 %v1957_v53, %s1732_s9 }
 0x138   :  { %1256 = vrot.lane.b32.xlu1 %v1992_v61, %s1732_s9 }
 0x13a   :  { %776 = vrot.lane.b32.xlu0 %v1949_v50, %s1731_s21  ;;  %v2397_v50 = vpop.f32.mrb[21].mxu0 }
 0x13b   :  { %v2403_v51 = vpack.c.bf16 %v2397_v50, %v2397_v50 }
 0x13c   :  { %778 = vrot.lane.b32.xlu1 %v1979_v58, %s1731_s21 }
 0x13d   :  { %736 = vst.msk [vmem:[%s3235_s2 + $0x50] sm:$0xf] %vm715_vm2, %v2403_v51 }
 0x13e   :  { %824 = vrot.lane.b32.xlu0 %v1955_v52, %s1731_s21  ;;  %v2405_v52 = vpop.f32.mrb[22].mxu0 }
 0x13f   :  { %v2414_v53 = vpack.c.bf16 %v2405_v52, %v2405_v52 }
 0x140   :  { %826 = vrot.lane.b32.xlu1 %v1990_v60, %s1731_s21 }
 0x141   :  { %739 = vst.msk [vmem:[%s3235_s2 + $0x5c] sm:$0xf] %vm715_vm2, %v2414_v53 }
 0x142   :  { %772 = vrot.lane.b32.xlu0 %v1961_v54, %s1731_s21  ;;  %v2416_v54 = vpop.f32.mrb[23].mxu0 }
 0x143   :  { %v2427_v55 = vpack.c.bf16 %v2416_v54, %v2416_v54 }
 0x144   :  { %774 = vrot.lane.b32.xlu1 %v2001_v62, %s1731_s21 }
 0x145   :  { %737 = vst.msk [vmem:[%s3235_s2 + $0x54] sm:$0xf] %vm715_vm2, %v2427_v55 }
 0x146   :  { %820 = vrot.lane.b32.xlu0 %v1967_v56, %s1731_s21  ;;  %v2429_v56 = vpop.f32.mrb[20].mxu1 }
 0x147   :  { %v2438_v57 = vpack.c.bf16 %v2429_v56, %v2429_v56  ;;  %v2440_v58 = vpop.f32.mrb[21].mxu1 }
 0x148   :  { %822 = vrot.lane.b32.xlu1 %v2010_v63, %s1731_s21  ;;  %v2451_v60 = vpack.c.bf16 %v2440_v58, %v2440_v58  ;;  %v2453_v61 = vpop.f32.mrb[22].mxu1 }
 0x149   :  { %762 = vst.msk [vmem:[%s3235_s2 + $0xb8] sm:$0xf] %vm715_vm2, %v2438_v57  ;;  %v2466_v62 = vpack.c.bf16 %v2453_v61, %v2453_v61  ;;  %v2468_v63 = vpop.f32.mrb[23].mxu1 }
 0x14a   :  { %1025 = vrot.lane.b32.xlu0 %v2034_v0, %s1730_s19  ;;  %760 = vst.msk [vmem:[%s3235_s2 + $0xb0] sm:$0xf] %vm715_vm2, %v2451_v60 }
 0x14b   :  { %763 = vst.msk [vmem:[%s3235_s2 + $0xbc] sm:$0xf] %vm715_vm2, %v2466_v62 }
 0x14c   :  { %1027 = vrot.lane.b32.xlu1 %v2056_v7, %s1730_s19 }
 0x14e   :  { %1073 = vrot.lane.b32.xlu0 %v2036_v1, %s1730_s19 }
 0x150   :  { %1075 = vrot.lane.b32.xlu1 %v2062_v9, %s1730_s19 }
 0x152   :  { %1218 = vrot.lane.b32.xlu0 %v2034_v0, %s1732_s9 }
 0x154   :  { %1220 = vrot.lane.b32.xlu1 %v2056_v7, %s1732_s9 }
 0x156   :  { %1266 = vrot.lane.b32.xlu0 %v2036_v1, %s1732_s9  ;;  %v2479_v1 = vpack.c.bf16 %v2468_v63, %v2468_v63 }
 0x158   :  { %1268 = vrot.lane.b32.xlu1 %v2062_v9, %s1732_s9  ;;  %761 = vst.msk [vmem:[%s3235_s2 + $0xb4] sm:$0xf] %vm715_vm2, %v2479_v1 }
 0x15a   :  { %1021 = vrot.lane.b32.xlu0 %v2044_v3, %s1730_s19 }
 0x15c   :  { %v1010_v59 = vpop.permute.xlu0 %1009  ;;  %1023 = vrot.lane.b32.xlu1 %v2074_v11, %s1730_s19 }
 0x15d   :  { %1152 = vst.msk [vmem:[%s3236_s3 + $0x10] sm:$0xff] %vm1149_vm3, %v1010_v59 }
 0x15e   :  { %v769_v0 = vpop.permute.xlu1 %768  ;;  %1069 = vrot.lane.b32.xlu0 %v2050_v5, %s1730_s19 }
 0x15f   :  { %1505 = vst.msk [vmem:[%s3235_s2 + $0xc8] sm:$0xf] %vm715_vm2, %v769_v0 }
 0x160   :  { %v1058_v7 = vpop.permute.xlu0 %1057  ;;  %1071 = vrot.lane.b32.xlu1 %v2085_v13, %s1730_s19 }
 0x161   :  { %1176 = vst.msk [vmem:[%s3236_s3 + $0xd0] sm:$0xff] %vm1149_vm3, %v1058_v7 }
 0x162   :  { %v1012_v9 = vpop.permute.xlu1 %1011  ;;  %1214 = vrot.lane.b32.xlu0 %v2044_v3, %s1732_s9 }
 0x163   :  { %1153 = vst.msk [vmem:[%s3236_s3 + $0x18] sm:$0xff] %vm1149_vm3, %v1012_v9 }
 0x164   :  { %v1203_v59 = vpop.permute.xlu0 %1202  ;;  %1216 = vrot.lane.b32.xlu1 %v2074_v11, %s1732_s9 }
 0x165   :  { %1344 = vst.msk [vmem:[%s3237_s4 + $0x10] sm:$0xff] %vm1149_vm3, %v1203_v59 }
 0x166   :  { %v1060_v0 = vpop.permute.xlu1 %1059  ;;  %1262 = vrot.lane.b32.xlu0 %v2050_v5, %s1732_s9 }
 0x167   :  { %1177 = vst.msk [vmem:[%s3236_s3 + $0xd8] sm:$0xff] %vm1149_vm3, %v1060_v0 }
 0x168   :  { %v1251_v3 = vpop.permute.xlu0 %1250  ;;  %1264 = vrot.lane.b32.xlu1 %v2085_v13, %s1732_s9 }
 0x169   :  { %1368 = vst.msk [vmem:[%s3237_s4 + $0xd0] sm:$0xff] %vm1149_vm3, %v1251_v3 }
 0x16a   :  { %v1205_v11 = vpop.permute.xlu1 %1204  ;;  %784 = vrot.lane.b32.xlu0 %v2042_v2, %s1731_s21 }
 0x16b   :  { %1345 = vst.msk [vmem:[%s3237_s4 + $0x18] sm:$0xff] %vm1149_vm3, %v1205_v11 }
 0x16c   :  { %v1006_v5 = vpop.permute.xlu0 %1005  ;;  %786 = vrot.lane.b32.xlu1 %v2072_v10, %s1731_s21 }
 0x16d   :  { %1150 = vst.msk [vmem:[%s3236_s3] sm:$0xff] %vm1149_vm3, %v1006_v5 }
 0x16e   :  { %v1253_v13 = vpop.permute.xlu1 %1252  ;;  %832 = vrot.lane.b32.xlu0 %v2048_v4, %s1731_s21 }
 0x16f   :  { %1369 = vst.msk [vmem:[%s3237_s4 + $0xd8] sm:$0xff] %vm1149_vm3, %v1253_v13 }
 0x170   :  { %v1054_v2 = vpop.permute.xlu0 %1053  ;;  %834 = vrot.lane.b32.xlu1 %v2083_v12, %s1731_s21 }
 0x171   :  { %1174 = vst.msk [vmem:[%s3236_s3 + $0xc0] sm:$0xff] %vm1149_vm3, %v1054_v2 }
 0x172   :  { %v1008_v10 = vpop.permute.xlu1 %1007  ;;  %780 = vrot.lane.b32.xlu0 %v2054_v6, %s1731_s21 }
 0x173   :  { %1151 = vst.msk [vmem:[%s3236_s3 + $0x8] sm:$0xff] %vm1149_vm3, %v1008_v10 }
 0x174   :  { %v1199_v4 = vpop.permute.xlu0 %1198  ;;  %782 = vrot.lane.b32.xlu1 %v2094_v14, %s1731_s21 }
 0x175   :  { %1342 = vst.msk [vmem:[%s3237_s4] sm:$0xff] %vm1149_vm3, %v1199_v4 }
 0x176   :  { %v1056_v12 = vpop.permute.xlu1 %1055  ;;  %828 = vrot.lane.b32.xlu0 %v2060_v8, %s1731_s21 }
 0x177   :  { %1175 = vst.msk [vmem:[%s3236_s3 + $0xc8] sm:$0xff] %vm1149_vm3, %v1056_v12 }
 0x178   :  { %v1247_v6 = vpop.permute.xlu0 %1246  ;;  %830 = vrot.lane.b32.xlu1 %v2103_v15, %s1731_s21 }
 0x179   :  { %1366 = vst.msk [vmem:[%s3237_s4 + $0xc0] sm:$0xff] %vm1149_vm3, %v1247_v6 }
 0x17a   :  { %v1201_v14 = vpop.permute.xlu1 %1200  ;;  %1033 = vrot.lane.b32.xlu0 %v2129_v16, %s1730_s19 }
 0x17b   :  { %1343 = vst.msk [vmem:[%s3237_s4 + $0x8] sm:$0xff] %vm1149_vm3, %v1201_v14 }
 0x17c   :  { %v817_v8 = vpop.permute.xlu0 %816  ;;  %1035 = vrot.lane.b32.xlu1 %v2151_v23, %s1730_s19 }
 0x17d   :  { %1529 = vst.msk [vmem:[%s3235_s2 + $0x128] sm:$0xf] %vm715_vm2, %v817_v8 }
 0x17e   :  { %v1249_v15 = vpop.permute.xlu1 %1248  ;;  %1081 = vrot.lane.b32.xlu0 %v2131_v17, %s1730_s19 }
 0x17f   :  { %1367 = vst.msk [vmem:[%s3237_s4 + $0xc8] sm:$0xff] %vm1149_vm3, %v1249_v15 }
 0x180   :  { %v765_v7 = vpop.permute.xlu0 %764  ;;  %1083 = vrot.lane.b32.xlu1 %v2157_v25, %s1730_s19 }
 0x181   :  { %1503 = vst.msk [vmem:[%s3235_s2 + $0xc0] sm:$0xf] %vm715_vm2, %v765_v7 }
 0x182   :  { %v771_v9 = vpop.permute.xlu1 %770  ;;  %1226 = vrot.lane.b32.xlu0 %v2129_v16, %s1732_s9 }
 0x183   :  { %1506 = vst.msk [vmem:[%s3235_s2 + $0xcc] sm:$0xf] %vm715_vm2, %v771_v9 }
 0x184   :  { %v813_v59 = vpop.permute.xlu0 %812  ;;  %1228 = vrot.lane.b32.xlu1 %v2151_v23, %s1732_s9 }
 0x185   :  { %1527 = vst.msk [vmem:[%s3235_s2 + $0x120] sm:$0xf] %vm715_vm2, %v813_v59 }
 0x186   :  { %v819_v0 = vpop.permute.xlu1 %818  ;;  %1274 = vrot.lane.b32.xlu0 %v2131_v17, %s1732_s9 }
 0x187   :  { %1530 = vst.msk [vmem:[%s3235_s2 + $0x12c] sm:$0xf] %vm715_vm2, %v819_v0 }
 0x188   :  { %v767_v16 = vpop.permute.xlu0 %766  ;;  %1276 = vrot.lane.b32.xlu1 %v2157_v25, %s1732_s9 }
 0x189   :  { %1504 = vst.msk [vmem:[%s3235_s2 + $0xc4] sm:$0xf] %vm715_vm2, %v767_v16 }
 0x18a   :  { %v815_v23 = vpop.permute.xlu1 %814  ;;  %1029 = vrot.lane.b32.xlu0 %v2139_v19, %s1730_s19 }
 0x18b   :  { %1528 = vst.msk [vmem:[%s3235_s2 + $0x124] sm:$0xf] %vm715_vm2, %v815_v23 }
 0x18c   :  { %v1018_v17 = vpop.permute.xlu0 %1017  ;;  %1031 = vrot.lane.b32.xlu1 %v2170_v27, %s1730_s19 }
 0x18d   :  { %1156 = vst.msk [vmem:[%s3236_s3 + $0x30] sm:$0xff] %vm1149_vm3, %v1018_v17 }
 0x18e   :  { %v1020_v25 = vpop.permute.xlu1 %1019  ;;  %1077 = vrot.lane.b32.xlu0 %v2145_v21, %s1730_s19 }
 0x18f   :  { %1157 = vst.msk [vmem:[%s3236_s3 + $0x38] sm:$0xff] %vm1149_vm3, %v1020_v25 }
 0x190   :  { %v1066_v3 = vpop.permute.xlu0 %1065  ;;  %1079 = vrot.lane.b32.xlu1 %v2181_v29, %s1730_s19 }
 0x191   :  { %1180 = vst.msk [vmem:[%s3236_s3 + $0xf0] sm:$0xff] %vm1149_vm3, %v1066_v3 }
 0x192   :  { %v1068_v11 = vpop.permute.xlu1 %1067  ;;  %1222 = vrot.lane.b32.xlu0 %v2139_v19, %s1732_s9 }
 0x193   :  { %1181 = vst.msk [vmem:[%s3236_s3 + $0xf8] sm:$0xff] %vm1149_vm3, %v1068_v11 }
 0x194   :  { %v1211_v5 = vpop.permute.xlu0 %1210  ;;  %1224 = vrot.lane.b32.xlu1 %v2170_v27, %s1732_s9 }
 0x195   :  { %1348 = vst.msk [vmem:[%s3237_s4 + $0x30] sm:$0xff] %vm1149_vm3, %v1211_v5 }
 0x196   :  { %v1213_v13 = vpop.permute.xlu1 %1212  ;;  %1270 = vrot.lane.b32.xlu0 %v2145_v21, %s1732_s9 }
 0x197   :  { %1349 = vst.msk [vmem:[%s3237_s4 + $0x38] sm:$0xff] %vm1149_vm3, %v1213_v13 }
 0x198   :  { %v1259_v19 = vpop.permute.xlu0 %1258  ;;  %1272 = vrot.lane.b32.xlu1 %v2181_v29, %s1732_s9 }
 0x199   :  { %1372 = vst.msk [vmem:[%s3237_s4 + $0xf0] sm:$0xff] %vm1149_vm3, %v1259_v19 }
 0x19a   :  { %v1261_v27 = vpop.permute.xlu1 %1260  ;;  %792 = vrot.lane.b32.xlu0 %v2137_v18, %s1731_s21 }
 0x19b   :  { %1373 = vst.msk [vmem:[%s3237_s4 + $0xf8] sm:$0xff] %vm1149_vm3, %v1261_v27 }
 0x19c   :  { %v1014_v21 = vpop.permute.xlu0 %1013  ;;  %794 = vrot.lane.b32.xlu1 %v2168_v26, %s1731_s21 }
 0x19d   :  { %1154 = vst.msk [vmem:[%s3236_s3 + $0x20] sm:$0xff] %vm1149_vm3, %v1014_v21 }
 0x19e   :  { %v1016_v29 = vpop.permute.xlu1 %1015  ;;  %840 = vrot.lane.b32.xlu0 %v2143_v20, %s1731_s21 }
 0x19f   :  { %1155 = vst.msk [vmem:[%s3236_s3 + $0x28] sm:$0xff] %vm1149_vm3, %v1016_v29 }
 0x1a0   :  { %v1062_v18 = vpop.permute.xlu0 %1061  ;;  %842 = vrot.lane.b32.xlu1 %v2179_v28, %s1731_s21 }
 0x1a1   :  { %1178 = vst.msk [vmem:[%s3236_s3 + $0xe0] sm:$0xff] %vm1149_vm3, %v1062_v18 }
 0x1a2   :  { %v1064_v26 = vpop.permute.xlu1 %1063  ;;  %788 = vrot.lane.b32.xlu0 %v2149_v22, %s1731_s21 }
 0x1a3   :  { %1179 = vst.msk [vmem:[%s3236_s3 + $0xe8] sm:$0xff] %vm1149_vm3, %v1064_v26 }
 0x1a4   :  { %v1207_v20 = vpop.permute.xlu0 %1206  ;;  %790 = vrot.lane.b32.xlu1 %v2190_v30, %s1731_s21 }
 0x1a5   :  { %1346 = vst.msk [vmem:[%s3237_s4 + $0x20] sm:$0xff] %vm1149_vm3, %v1207_v20 }
 0x1a6   :  { %v1209_v28 = vpop.permute.xlu1 %1208  ;;  %836 = vrot.lane.b32.xlu0 %v2155_v24, %s1731_s21 }
 0x1a7   :  { %1347 = vst.msk [vmem:[%s3237_s4 + $0x28] sm:$0xff] %vm1149_vm3, %v1209_v28 }
 0x1a8   :  { %v1255_v22 = vpop.permute.xlu0 %1254  ;;  %838 = vrot.lane.b32.xlu1 %v2199_v31, %s1731_s21 }
 0x1a9   :  { %1370 = vst.msk [vmem:[%s3237_s4 + $0xe0] sm:$0xff] %vm1149_vm3, %v1255_v22 }
 0x1aa   :  { %v1257_v30 = vpop.permute.xlu1 %1256  ;;  %1041 = vrot.lane.b32.xlu0 %v2255_v32, %s1730_s19 }
 0x1ab   :  { %1371 = vst.msk [vmem:[%s3237_s4 + $0xe8] sm:$0xff] %vm1149_vm3, %v1257_v30 }
 0x1ac   :  { %v777_v24 = vpop.permute.xlu0 %776  ;;  %1043 = vrot.lane.b32.xlu1 %v2269_v36, %s1730_s19 }
 0x1ad   :  { %1509 = vst.msk [vmem:[%s3235_s2 + $0xd8] sm:$0xf] %vm715_vm2, %v777_v24 }
 0x1ae   :  { %v779_v31 = vpop.permute.xlu1 %778  ;;  %1089 = vrot.lane.b32.xlu0 %v2282_v39, %s1730_s19 }
 0x1af   :  { %1510 = vst.msk [vmem:[%s3235_s2 + $0xdc] sm:$0xf] %vm715_vm2, %v779_v31 }
 0x1b0   :  { %v825_v2 = vpop.permute.xlu0 %824  ;;  %1091 = vrot.lane.b32.xlu1 %v2322_v44, %s1730_s19 }
 0x1b1   :  { %1533 = vst.msk [vmem:[%s3235_s2 + $0x138] sm:$0xf] %vm715_vm2, %v825_v2 }
 0x1b2   :  { %v827_v10 = vpop.permute.xlu1 %826  ;;  %1234 = vrot.lane.b32.xlu0 %v2255_v32, %s1732_s9 }
 0x1b3   :  { %1534 = vst.msk [vmem:[%s3235_s2 + $0x13c] sm:$0xf] %vm715_vm2, %v827_v10 }
 0x1b4   :  { %v773_v4 = vpop.permute.xlu0 %772  ;;  %1236 = vrot.lane.b32.xlu1 %v2269_v36, %s1732_s9 }
 0x1b5   :  { %1507 = vst.msk [vmem:[%s3235_s2 + $0xd0] sm:$0xf] %vm715_vm2, %v773_v4 }
 0x1b6   :  { %v775_v12 = vpop.permute.xlu1 %774  ;;  %1282 = vrot.lane.b32.xlu0 %v2282_v39, %s1732_s9 }
 0x1b7   :  { %1508 = vst.msk [vmem:[%s3235_s2 + $0xd4] sm:$0xf] %vm715_vm2, %v775_v12 }
 0x1b8   :  { %v821_v32 = vpop.permute.xlu0 %820  ;;  %1284 = vrot.lane.b32.xlu1 %v2322_v44, %s1732_s9 }
 0x1b9   :  { %1531 = vst.msk [vmem:[%s3235_s2 + $0x130] sm:$0xf] %vm715_vm2, %v821_v32 }
 0x1ba   :  { %v823_v36 = vpop.permute.xlu1 %822  ;;  %1037 = vrot.lane.b32.xlu0 %v2261_v34, %s1730_s19 }
 0x1bb   :  { %1532 = vst.msk [vmem:[%s3235_s2 + $0x134] sm:$0xf] %vm715_vm2, %v823_v36 }
 0x1bc   :  { %v1026_v39 = vpop.permute.xlu0 %1025  ;;  %1039 = vrot.lane.b32.xlu1 %v2280_v38, %s1730_s19 }
 0x1bd   :  { %1160 = vst.msk [vmem:[%s3236_s3 + $0x50] sm:$0xff] %vm1149_vm3, %v1026_v39 }
 0x1be   :  { %v1028_v44 = vpop.permute.xlu1 %1027  ;;  %1085 = vrot.lane.b32.xlu0 %v2304_v42, %s1730_s19 }
 0x1bf   :  { %1161 = vst.msk [vmem:[%s3236_s3 + $0x58] sm:$0xff] %vm1149_vm3, %v1028_v44 }
 0x1c0   :  { %v1074_v6 = vpop.permute.xlu0 %1073  ;;  %1087 = vrot.lane.b32.xlu1 %v2328_v46, %s1730_s19 }
 0x1c1   :  { %1184 = vst.msk [vmem:[%s3236_s3 + $0x110] sm:$0xff] %vm1149_vm3, %v1074_v6 }
 0x1c2   :  { %v1076_v14 = vpop.permute.xlu1 %1075  ;;  %1230 = vrot.lane.b32.xlu0 %v2261_v34, %s1732_s9 }
 0x1c3   :  { %1185 = vst.msk [vmem:[%s3236_s3 + $0x118] sm:$0xff] %vm1149_vm3, %v1076_v14 }
 0x1c4   :  { %v1219_v8 = vpop.permute.xlu0 %1218  ;;  %1232 = vrot.lane.b32.xlu1 %v2280_v38, %s1732_s9 }
 0x1c5   :  { %1352 = vst.msk [vmem:[%s3237_s4 + $0x50] sm:$0xff] %vm1149_vm3, %v1219_v8 }
 0x1c6   :  { %v1221_v15 = vpop.permute.xlu1 %1220  ;;  %1278 = vrot.lane.b32.xlu0 %v2304_v42, %s1732_s9 }
 0x1c7   :  { %1353 = vst.msk [vmem:[%s3237_s4 + $0x58] sm:$0xff] %vm1149_vm3, %v1221_v15 }
 0x1c8   :  { %v1267_v34 = vpop.permute.xlu0 %1266  ;;  %1280 = vrot.lane.b32.xlu1 %v2328_v46, %s1732_s9 }
 0x1c9   :  { %1376 = vst.msk [vmem:[%s3237_s4 + $0x110] sm:$0xff] %vm1149_vm3, %v1267_v34 }
 0x1ca   :  { %v1269_v38 = vpop.permute.xlu1 %1268  ;;  %800 = vrot.lane.b32.xlu0 %v2259_v33, %s1731_s21 }
 0x1cb   :  { %1377 = vst.msk [vmem:[%s3237_s4 + $0x118] sm:$0xff] %vm1149_vm3, %v1269_v38 }
 0x1cc   :  { %v1022_v42 = vpop.permute.xlu0 %1021  ;;  %802 = vrot.lane.b32.xlu1 %v2278_v37, %s1731_s21 }
 0x1cd   :  { %1158 = vst.msk [vmem:[%s3236_s3 + $0x40] sm:$0xff] %vm1149_vm3, %v1022_v42 }
 0x1ce   :  { %v1024_v46 = vpop.permute.xlu1 %1023  ;;  %848 = vrot.lane.b32.xlu0 %v2297_v41, %s1731_s21 }
 0x1cf   :  { %1159 = vst.msk [vmem:[%s3236_s3 + $0x48] sm:$0xff] %vm1149_vm3, %v1024_v46 }
 0x1d0   :  { %v1070_v33 = vpop.permute.xlu0 %1069  ;;  %850 = vrot.lane.b32.xlu1 %v2326_v45, %s1731_s21 }
 0x1d1   :  { %1182 = vst.msk [vmem:[%s3236_s3 + $0x100] sm:$0xff] %vm1149_vm3, %v1070_v33 }
 0x1d2   :  { %v1072_v37 = vpop.permute.xlu1 %1071  ;;  %796 = vrot.lane.b32.xlu0 %v2267_v35, %s1731_s21 }
 0x1d3   :  { %1183 = vst.msk [vmem:[%s3236_s3 + $0x108] sm:$0xff] %vm1149_vm3, %v1072_v37 }
 0x1d4   :  { %v1215_v41 = vpop.permute.xlu0 %1214  ;;  %798 = vrot.lane.b32.xlu1 %v2293_v40, %s1731_s21 }
 0x1d5   :  { %1350 = vst.msk [vmem:[%s3237_s4 + $0x40] sm:$0xff] %vm1149_vm3, %v1215_v41 }
 0x1d6   :  { %v1217_v45 = vpop.permute.xlu1 %1216  ;;  %844 = vrot.lane.b32.xlu0 %v2320_v43, %s1731_s21 }
 0x1d7   :  { %1351 = vst.msk [vmem:[%s3237_s4 + $0x48] sm:$0xff] %vm1149_vm3, %v1217_v45 }
 0x1d8   :  { %v1263_v35 = vpop.permute.xlu0 %1262  ;;  %846 = vrot.lane.b32.xlu1 %v2339_v47, %s1731_s21 }
 0x1d9   :  { %1374 = vst.msk [vmem:[%s3237_s4 + $0x100] sm:$0xff] %vm1149_vm3, %v1263_v35 }
 0x1da   :  { %v1265_v40 = vpop.permute.xlu1 %1264  ;;  %1049 = vrot.lane.b32.xlu0 %v2391_v48, %s1730_s19 }
 0x1db   :  { %1375 = vst.msk [vmem:[%s3237_s4 + $0x108] sm:$0xff] %vm1149_vm3, %v1265_v40 }
 0x1dc   :  { %v785_v43 = vpop.permute.xlu0 %784  ;;  %1051 = vrot.lane.b32.xlu1 %v2405_v52, %s1730_s19 }
 0x1dd   :  { %1513 = vst.msk [vmem:[%s3235_s2 + $0xe8] sm:$0xf] %vm715_vm2, %v785_v43 }
 0x1de   :  { %v787_v47 = vpop.permute.xlu1 %786  ;;  %1097 = vrot.lane.b32.xlu0 %v2429_v56, %s1730_s19 }
 0x1df   :  { %1514 = vst.msk [vmem:[%s3235_s2 + $0xec] sm:$0xf] %vm715_vm2, %v787_v47 }
 0x1e0   :  { %v833_v7 = vpop.permute.xlu0 %832  ;;  %1099 = vrot.lane.b32.xlu1 %v2453_v61, %s1730_s19 }
 0x1e1   :  { %1537 = vst.msk [vmem:[%s3235_s2 + $0x148] sm:$0xf] %vm715_vm2, %v833_v7 }
 0x1e2   :  { %v835_v9 = vpop.permute.xlu1 %834  ;;  %1242 = vrot.lane.b32.xlu0 %v2391_v48, %s1732_s9 }
 0x1e3   :  { %1538 = vst.msk [vmem:[%s3235_s2 + $0x14c] sm:$0xf] %vm715_vm2, %v835_v9 }
 0x1e4   :  { %v781_v59 = vpop.permute.xlu0 %780  ;;  %1244 = vrot.lane.b32.xlu1 %v2405_v52, %s1732_s9 }
 0x1e5   :  { %1511 = vst.msk [vmem:[%s3235_s2 + $0xe0] sm:$0xf] %vm715_vm2, %v781_v59 }
 0x1e6   :  { %v783_v0 = vpop.permute.xlu1 %782  ;;  %1045 = vrot.lane.b32.xlu0 %v2397_v50, %s1730_s19 }
 0x1e7   :  { %1512 = vst.msk [vmem:[%s3235_s2 + $0xe4] sm:$0xf] %vm715_vm2, %v783_v0 }
 0x1e8   :  { %v829_v48 = vpop.permute.xlu0 %828  ;;  %1047 = vrot.lane.b32.xlu1 %v2416_v54, %s1730_s19 }
 0x1e9   :  { %1535 = vst.msk [vmem:[%s3235_s2 + $0x140] sm:$0xf] %vm715_vm2, %v829_v48 }
 0x1ea   :  { %v831_v52 = vpop.permute.xlu1 %830  ;;  %1093 = vrot.lane.b32.xlu0 %v2440_v58, %s1730_s19 }
 0x1eb   :  { %1536 = vst.msk [vmem:[%s3235_s2 + $0x144] sm:$0xf] %vm715_vm2, %v831_v52 }
 0x1ec   :  { %v1034_v16 = vpop.permute.xlu0 %1033  ;;  %1095 = vrot.lane.b32.xlu1 %v2468_v63, %s1730_s19 }
 0x1ed   :  { %1164 = vst.msk [vmem:[%s3236_s3 + $0x70] sm:$0xff] %vm1149_vm3, %v1034_v16 }
 0x1ee   :  { %v1036_v23 = vpop.permute.xlu1 %1035  ;;  %1238 = vrot.lane.b32.xlu0 %v2397_v50, %s1732_s9 }
 0x1ef   :  { %1165 = vst.msk [vmem:[%s3236_s3 + $0x78] sm:$0xff] %vm1149_vm3, %v1036_v23 }
 0x1f0   :  { %v1082_v17 = vpop.permute.xlu0 %1081  ;;  %1240 = vrot.lane.b32.xlu1 %v2416_v54, %s1732_s9 }
 0x1f1   :  { %1188 = vst.msk [vmem:[%s3236_s3 + $0x130] sm:$0xff] %vm1149_vm3, %v1082_v17 }
 0x1f2   :  { %v1084_v25 = vpop.permute.xlu1 %1083  ;;  %808 = vrot.lane.b32.xlu0 %v2395_v49, %s1731_s21 }
 0x1f3   :  { %1189 = vst.msk [vmem:[%s3236_s3 + $0x138] sm:$0xff] %vm1149_vm3, %v1084_v25 }
 0x1f4   :  { %v1227_v50 = vpop.permute.xlu0 %1226  ;;  %1288 = vrot.lane.b32.xlu1 %v2468_v63, %s1732_s9 }
 0x1f5   :  { %1356 = vst.msk [vmem:[%s3237_s4 + $0x70] sm:$0xff] %vm1149_vm3, %v1227_v50 }
 0x1f6   :  { %v1229_v54 = vpop.permute.xlu1 %1228  ;;  %856 = vrot.lane.b32.xlu0 %v2438_v57, %s1731_s21 }
 0x1f7   :  { %1357 = vst.msk [vmem:[%s3237_s4 + $0x78] sm:$0xff] %vm1149_vm3, %v1229_v54 }
 0x1f8   :  { %v1275_v49 = vpop.permute.xlu0 %1274  ;;  %810 = vrot.lane.b32.xlu1 %v2414_v53, %s1731_s21 }
 0x1f9   :  { %1380 = vst.msk [vmem:[%s3237_s4 + $0x130] sm:$0xff] %vm1149_vm3, %v1275_v49 }
 0x1fa   :  { %v1277_v63 = vpop.permute.xlu1 %1276  ;;  %804 = vrot.lane.b32.xlu0 %v2403_v51, %s1731_s21 }
 0x1fb   :  { %1381 = vst.msk [vmem:[%s3237_s4 + $0x138] sm:$0xff] %vm1149_vm3, %v1277_v63 }
 0x1fc   :  { %v1030_v57 = vpop.permute.xlu0 %1029  ;;  %858 = vrot.lane.b32.xlu1 %v2466_v62, %s1731_s21 }
 0x1fd   :  { %1162 = vst.msk [vmem:[%s3236_s3 + $0x60] sm:$0xff] %vm1149_vm3, %v1030_v57 }
 0x1fe   :  { %v1032_v53 = vpop.permute.xlu1 %1031  ;;  %852 = vrot.lane.b32.xlu0 %v2451_v60, %s1731_s21 }
 0x1ff   :  { %1163 = vst.msk [vmem:[%s3236_s3 + $0x68] sm:$0xff] %vm1149_vm3, %v1032_v53 }
 0x200   :  { %v1078_v51 = vpop.permute.xlu0 %1077  ;;  %806 = vrot.lane.b32.xlu1 %v2427_v55, %s1731_s21 }
 0x201   :  { %1186 = vst.msk [vmem:[%s3236_s3 + $0x120] sm:$0xff] %vm1149_vm3, %v1078_v51 }
 0x202   :  { %v1080_v62 = vpop.permute.xlu1 %1079  ;;  %1286 = vrot.lane.b32.xlu0 %v2440_v58, %s1732_s9 }
 0x203   :  { %1187 = vst.msk [vmem:[%s3236_s3 + $0x128] sm:$0xff] %vm1149_vm3, %v1080_v62 }
 0x204   :  { %v1223_v60 = vpop.permute.xlu0 %1222  ;;  %854 = vrot.lane.b32.xlu1 %v2479_v1, %s1731_s21 }
 0x205   :  { %1354 = vst.msk [vmem:[%s3237_s4 + $0x60] sm:$0xff] %vm1149_vm3, %v1223_v60 }
 0x206   :  { %v1225_v55 = vpop.permute.xlu1 %1224  ;;  %1290 = vrot.lane.b32.xlu0 %v2429_v56, %s1732_s9 }
 0x207   :  { %1355 = vst.msk [vmem:[%s3237_s4 + $0x68] sm:$0xff] %vm1149_vm3, %v1225_v55 }
 0x208   :  { %v1271_v58 = vpop.permute.xlu0 %1270  ;;  %1292 = vrot.lane.b32.xlu1 %v2453_v61, %s1732_s9 }
 0x209   :  { %1378 = vst.msk [vmem:[%s3237_s4 + $0x120] sm:$0xff] %vm1149_vm3, %v1271_v58 }
 0x20a   :  { %v1273_v1 = vpop.permute.xlu1 %1272 }
 0x20b   :  { %1379 = vst.msk [vmem:[%s3237_s4 + $0x128] sm:$0xff] %vm1149_vm3, %v1273_v1 }
 0x20c   :  { %v793_v56 = vpop.permute.xlu0 %792 }
 0x20d   :  { %1517 = vst.msk [vmem:[%s3235_s2 + $0xf8] sm:$0xf] %vm715_vm2, %v793_v56 }
 0x20e   :  { %v795_v3 = vpop.permute.xlu1 %794 }
 0x20f   :  { %1518 = vst.msk [vmem:[%s3235_s2 + $0xfc] sm:$0xf] %vm715_vm2, %v795_v3 }
 0x210   :  { %v841_v61 = vpop.permute.xlu0 %840 }
 0x211   :  { %1541 = vst.msk [vmem:[%s3235_s2 + $0x158] sm:$0xf] %vm715_vm2, %v841_v61 }
 0x212   :  { %v843_v11 = vpop.permute.xlu1 %842 }
 0x213   :  { %1542 = vst.msk [vmem:[%s3235_s2 + $0x15c] sm:$0xf] %vm715_vm2, %v843_v11 }
 0x214   :  { %v789_v5 = vpop.permute.xlu0 %788 }
 0x215   :  { %1515 = vst.msk [vmem:[%s3235_s2 + $0xf0] sm:$0xf] %vm715_vm2, %v789_v5 }
 0x216   :  { %v791_v13 = vpop.permute.xlu1 %790 }
 0x217   :  { %1516 = vst.msk [vmem:[%s3235_s2 + $0xf4] sm:$0xf] %vm715_vm2, %v791_v13 }
 0x218   :  { %v837_v19 = vpop.permute.xlu0 %836 }
 0x219   :  { %1539 = vst.msk [vmem:[%s3235_s2 + $0x150] sm:$0xf] %vm715_vm2, %v837_v19 }
 0x21a   :  { %v839_v27 = vpop.permute.xlu1 %838 }
 0x21b   :  { %1540 = vst.msk [vmem:[%s3235_s2 + $0x154] sm:$0xf] %vm715_vm2, %v839_v27 }
 0x21c   :  { %v1042_v21 = vpop.permute.xlu0 %1041 }
 0x21d   :  { %1168 = vst.msk [vmem:[%s3236_s3 + $0x90] sm:$0xff] %vm1149_vm3, %v1042_v21 }
 0x21e   :  { %v1044_v29 = vpop.permute.xlu1 %1043 }
 0x21f   :  { %1169 = vst.msk [vmem:[%s3236_s3 + $0x98] sm:$0xff] %vm1149_vm3, %v1044_v29 }
 0x220   :  { %v1090_v18 = vpop.permute.xlu0 %1089 }
 0x221   :  { %1192 = vst.msk [vmem:[%s3236_s3 + $0x150] sm:$0xff] %vm1149_vm3, %v1090_v18 }
 0x222   :  { %v1092_v26 = vpop.permute.xlu1 %1091 }
 0x223   :  { %1193 = vst.msk [vmem:[%s3236_s3 + $0x158] sm:$0xff] %vm1149_vm3, %v1092_v26 }
 0x224   :  { %v1235_v20 = vpop.permute.xlu0 %1234 }
 0x225   :  { %1360 = vst.msk [vmem:[%s3237_s4 + $0x90] sm:$0xff] %vm1149_vm3, %v1235_v20 }
 0x226   :  { %v1237_v28 = vpop.permute.xlu1 %1236 }
 0x227   :  { %1361 = vst.msk [vmem:[%s3237_s4 + $0x98] sm:$0xff] %vm1149_vm3, %v1237_v28 }
 0x228   :  { %v1283_v22 = vpop.permute.xlu0 %1282 }
 0x229   :  { %1384 = vst.msk [vmem:[%s3237_s4 + $0x150] sm:$0xff] %vm1149_vm3, %v1283_v22 }
 0x22a   :  { %v1285_v30 = vpop.permute.xlu1 %1284 }
 0x22b   :  { %1385 = vst.msk [vmem:[%s3237_s4 + $0x158] sm:$0xff] %vm1149_vm3, %v1285_v30 }
 0x22c   :  { %v1038_v24 = vpop.permute.xlu0 %1037 }
 0x22d   :  { %1166 = vst.msk [vmem:[%s3236_s3 + $0x80] sm:$0xff] %vm1149_vm3, %v1038_v24 }
 0x22e   :  { %v1040_v31 = vpop.permute.xlu1 %1039 }
 0x22f   :  { %1167 = vst.msk [vmem:[%s3236_s3 + $0x88] sm:$0xff] %vm1149_vm3, %v1040_v31 }
 0x230   :  { %v1086_v2 = vpop.permute.xlu0 %1085 }
 0x231   :  { %1190 = vst.msk [vmem:[%s3236_s3 + $0x140] sm:$0xff] %vm1149_vm3, %v1086_v2 }
 0x232   :  { %v1088_v10 = vpop.permute.xlu1 %1087 }
 0x233   :  { %1191 = vst.msk [vmem:[%s3236_s3 + $0x148] sm:$0xff] %vm1149_vm3, %v1088_v10 }
 0x234   :  { %v1231_v4 = vpop.permute.xlu0 %1230 }
 0x235   :  { %1358 = vst.msk [vmem:[%s3237_s4 + $0x80] sm:$0xff] %vm1149_vm3, %v1231_v4 }
 0x236   :  { %v1233_v12 = vpop.permute.xlu1 %1232 }
 0x237   :  { %1359 = vst.msk [vmem:[%s3237_s4 + $0x88] sm:$0xff] %vm1149_vm3, %v1233_v12 }
 0x238   :  { %v1279_v32 = vpop.permute.xlu0 %1278 }
 0x239   :  { %1382 = vst.msk [vmem:[%s3237_s4 + $0x140] sm:$0xff] %vm1149_vm3, %v1279_v32 }
 0x23a   :  { %v1281_v36 = vpop.permute.xlu1 %1280 }
 0x23b   :  { %1383 = vst.msk [vmem:[%s3237_s4 + $0x148] sm:$0xff] %vm1149_vm3, %v1281_v36 }
 0x23c   :  { %v801_v39 = vpop.permute.xlu0 %800 }
 0x23d   :  { %1521 = vst.msk [vmem:[%s3235_s2 + $0x108] sm:$0xf] %vm715_vm2, %v801_v39 }
 0x23e   :  { %v803_v44 = vpop.permute.xlu1 %802 }
 0x23f   :  { %1522 = vst.msk [vmem:[%s3235_s2 + $0x10c] sm:$0xf] %vm715_vm2, %v803_v44 }
 0x240   :  { %v849_v6 = vpop.permute.xlu0 %848 }
 0x241   :  { %1545 = vst.msk [vmem:[%s3235_s2 + $0x168] sm:$0xf] %vm715_vm2, %v849_v6 }
 0x242   :  { %v851_v14 = vpop.permute.xlu1 %850 }
 0x243   :  { %1546 = vst.msk [vmem:[%s3235_s2 + $0x16c] sm:$0xf] %vm715_vm2, %v851_v14 }
 0x244   :  { %v797_v8 = vpop.permute.xlu0 %796 }
 0x245   :  { %1519 = vst.msk [vmem:[%s3235_s2 + $0x100] sm:$0xf] %vm715_vm2, %v797_v8 }
 0x246   :  { %v799_v15 = vpop.permute.xlu1 %798 }
 0x247   :  { %1520 = vst.msk [vmem:[%s3235_s2 + $0x104] sm:$0xf] %vm715_vm2, %v799_v15 }
 0x248   :  { %v845_v34 = vpop.permute.xlu0 %844 }
 0x249   :  { %1543 = vst.msk [vmem:[%s3235_s2 + $0x160] sm:$0xf] %vm715_vm2, %v845_v34 }
 0x24a   :  { %v847_v38 = vpop.permute.xlu1 %846 }
 0x24b   :  { %1544 = vst.msk [vmem:[%s3235_s2 + $0x164] sm:$0xf] %vm715_vm2, %v847_v38 }
 0x24c   :  { %v1050_v42 = vpop.permute.xlu0 %1049 }
 0x24d   :  { %1172 = vst.msk [vmem:[%s3236_s3 + $0xb0] sm:$0xff] %vm1149_vm3, %v1050_v42 }
 0x24e   :  { %v1052_v46 = vpop.permute.xlu1 %1051 }
 0x24f   :  { %1173 = vst.msk [vmem:[%s3236_s3 + $0xb8] sm:$0xff] %vm1149_vm3, %v1052_v46 }
 0x250   :  { %v1098_v33 = vpop.permute.xlu0 %1097 }
 0x251   :  { %1196 = vst.msk [vmem:[%s3236_s3 + $0x170] sm:$0xff] %vm1149_vm3, %v1098_v33 }
 0x252   :  { %v1100_v37 = vpop.permute.xlu1 %1099 }
 0x253   :  { %1197 = vst.msk [vmem:[%s3236_s3 + $0x178] sm:$0xff] %vm1149_vm3, %v1100_v37 }
 0x254   :  { %v1243_v41 = vpop.permute.xlu0 %1242 }
 0x255   :  { %1364 = vst.msk [vmem:[%s3237_s4 + $0xb0] sm:$0xff] %vm1149_vm3, %v1243_v41 }
 0x256   :  { %v1245_v45 = vpop.permute.xlu1 %1244 }
 0x257   :  { %1365 = vst.msk [vmem:[%s3237_s4 + $0xb8] sm:$0xff] %vm1149_vm3, %v1245_v45 }
 0x258   :  { %v1046_v35 = vpop.permute.xlu0 %1045 }
 0x259   :  { %1170 = vst.msk [vmem:[%s3236_s3 + $0xa0] sm:$0xff] %vm1149_vm3, %v1046_v35 }
 0x25a   :  { %v1048_v40 = vpop.permute.xlu1 %1047 }
 0x25b   :  { %1171 = vst.msk [vmem:[%s3236_s3 + $0xa8] sm:$0xff] %vm1149_vm3, %v1048_v40 }
 0x25c   :  { %v1094_v43 = vpop.permute.xlu0 %1093 }
 0x25d   :  { %1194 = vst.msk [vmem:[%s3236_s3 + $0x160] sm:$0xff] %vm1149_vm3, %v1094_v43 }
 0x25e   :  { %v1096_v47 = vpop.permute.xlu1 %1095 }
 0x25f   :  { %1195 = vst.msk [vmem:[%s3236_s3 + $0x168] sm:$0xff] %vm1149_vm3, %v1096_v47 }
 0x260   :  { %v1239_v7 = vpop.permute.xlu0 %1238 }
 0x261   :  { %1362 = vst.msk [vmem:[%s3237_s4 + $0xa0] sm:$0xff] %vm1149_vm3, %v1239_v7 }
 0x262   :  { %v1241_v9 = vpop.permute.xlu1 %1240 }
 0x263   :  { %1363 = vst.msk [vmem:[%s3237_s4 + $0xa8] sm:$0xff] %vm1149_vm3, %v1241_v9 }
 0x264   :  { %v809_v59 = vpop.permute.xlu0 %808 }
 0x265   :  { %1525 = vst.msk [vmem:[%s3235_s2 + $0x118] sm:$0xf] %vm715_vm2, %v809_v59 }
 0x266   :  { %v1289_v0 = vpop.permute.xlu1 %1288 }
 0x267   :  { %1387 = vst.msk [vmem:[%s3237_s4 + $0x168] sm:$0xff] %vm1149_vm3, %v1289_v0 }
 0x268   :  { %v857_v48 = vpop.permute.xlu0 %856 }
 0x269   :  { %1549 = vst.msk [vmem:[%s3235_s2 + $0x178] sm:$0xf] %vm715_vm2, %v857_v48 }
 0x26a   :  { %v811_v52 = vpop.permute.xlu1 %810 }
 0x26b   :  { %1526 = vst.msk [vmem:[%s3235_s2 + $0x11c] sm:$0xf] %vm715_vm2, %v811_v52 }
 0x26c   :  { %v805_v16 = vpop.permute.xlu0 %804 }
 0x26d   :  { %1523 = vst.msk [vmem:[%s3235_s2 + $0x110] sm:$0xf] %vm715_vm2, %v805_v16 }
 0x26e   :  { %v859_v23 = vpop.permute.xlu1 %858 }
 0x26f   :  { %1550 = vst.msk [vmem:[%s3235_s2 + $0x17c] sm:$0xf] %vm715_vm2, %v859_v23 }
 0x270   :  { %v853_v17 = vpop.permute.xlu0 %852 }
 0x271   :  { %1547 = vst.msk [vmem:[%s3235_s2 + $0x170] sm:$0xf] %vm715_vm2, %v853_v17 }
 0x272   :  { %v807_v25 = vpop.permute.xlu1 %806 }
 0x273   :  { %1524 = vst.msk [vmem:[%s3235_s2 + $0x114] sm:$0xf] %vm715_vm2, %v807_v25 }
 0x274   :  { %v1287_v50 = vpop.permute.xlu0 %1286 }
 0x275   :  { %1386 = vst.msk [vmem:[%s3237_s4 + $0x160] sm:$0xff] %vm1149_vm3, %v1287_v50 }
 0x276   :  { %v855_v54 = vpop.permute.xlu1 %854 }
 0x277   :  { %1548 = vst.msk [vmem:[%s3235_s2 + $0x174] sm:$0xf] %vm715_vm2, %v855_v54 }
 0x278   :  { %v1291_v49 = vpop.permute.xlu0 %1290 }
 0x279   :  { %1388 = vst.msk [vmem:[%s3237_s4 + $0x170] sm:$0xff] %vm1149_vm3, %v1291_v49 }
 0x27a   :  { %v1293_v63 = vpop.permute.xlu1 %1292 }
 0x27b   :  { %1389 = vst.msk [vmem:[%s3237_s4 + $0x178] sm:$0xff] %vm1149_vm3, %v1293_v63 }

</bundles_post_ra>
